<compile_context>
chip_gen: v7x
topology: tpu7x:2x2x1
jax: 0.10.0
libtpu: 0.0.40
codegen_flags: <defaults>
</compile_context>

<pallas_src>
import functools

import jax
import jax.numpy as jnp
from jax import lax
from jax.experimental import pallas as pl
from jax.experimental.pallas import tpu as pltpu

_LANE = 128


def _mse_sum_kernel(out_ref, lab_ref, psum_ref, acc_ref, *, inv_scale,
                    rows_valid, tile, steps, n_chunks, needs_mask):
    """Accumulate sum((out - lab)^2) over grid axis 1 (the reduction axis)."""
    c = pl.program_id(0)
    i = pl.program_id(1)

    @pl.when(i == 0)
    def _init():
        acc_ref[...] = jnp.zeros_like(acc_ref)

    lane = acc_ref.shape[1]
    chunk = tile // n_chunks
    # Logical (unclamped) first row of this block in the global slab; used to
    # mask rows past the valid extent when the grid over-covers the array.
    row0 = (c * steps + i) * tile

    def accumulate(chunk_start):
        o = out_ref[pl.ds(chunk_start, chunk), :].astype(jnp.float32)
        l = lab_ref[pl.ds(chunk_start, chunk), :].astype(jnp.float32)
        d = o - l
        dd = d * d
        if needs_mask:
            rid = row0 + chunk_start + lax.broadcasted_iota(
                jnp.int32, (chunk, lane), 0)
            dd = jnp.where(rid < rows_valid, dd, 0.0)
        # Vreg-shaped partial accumulation: reduce across the leading (vreg)
        # axis only -> pure VPU adds, no per-step cross-lane XLU reduce.
        acc_ref[...] += jnp.sum(dd.reshape(chunk // 8, 8, lane), axis=0)

    if n_chunks == 1:
        accumulate(0)
    else:
        # Chunked accumulation keeps the squared-diff temporaries small
        # (chunk x 128 f32) instead of materializing a full-tile VMEM temp.
        def body(k, carry):
            accumulate(pl.multiple_of(k * chunk, 8))
            return carry
        lax.fori_loop(0, n_chunks, body, 0)

    @pl.when(i == pl.num_programs(1) - 1)
    def _finalize():
        # Single cross-lane/sublane reduce + fused scaling, once per split.
        psum_ref[0, 0] = jnp.sum(acc_ref[...]) * jnp.float32(inv_scale)


def _tpu_config():
    """Per-generation (max_tile_rows, num_splits) defaults."""
    kind = ""
    try:
        kind = jax.devices()[0].device_kind.lower()
    except Exception:
        pass
    # Two TensorCores share one device on v4/v5p (megacore) and v7x.
    num_splits = 2 if any(t in kind for t in ("v4", "v5p", "v7", "7x")) else 1
    # 8192-row (4 MiB) blocks -> 16 MiB double-buffered inputs: fits v6e/v7x's
    # 32 MiB default scoped-VMEM limit; stay at 4096 rows elsewhere (v5e's
    # default scoped limit is 16 MiB).
    max_tile_rows = 8192 if any(t in kind for t in ("v6", "v7", "7x")) else 4096
    return max_tile_rows, num_splits


def custom_loss(output, labels, *, lane=_LANE, max_tile_rows=None,
                num_splits=None):
    """Pallas equivalent of CustomLossFunction.forward(output, labels)."""
    assert output.shape == labels.shape, (output.shape, labels.shape)
    batch_size = output.shape[0]
    total = output.size
    inv_scale = 1.0 / (float(total) * float(batch_size))

    auto_tile, auto_splits = _tpu_config()
    max_tile_rows = auto_tile if max_tile_rows is None else max_tile_rows
    num_splits = max(1, auto_splits if num_splits is None else num_splits)

    rows_data = total // lane

    if rows_data >= 8 and total % lane == 0:
        # Zero-copy path: reshape to a lane-dense (rows, 128) slab is a
        # bitcast; no padded HBM copies of the inputs.  Grid over-coverage of
        # the slab is handled by the in-kernel row mask.
        rows_slab = rows_data
        rows_valid = rows_data
        out2d = output.reshape(rows_slab, lane)
        lab2d = labels.reshape(rows_slab, lane)
        tile = max(8, min(max_tile_rows, (rows_slab // 8) * 8))
    else:
        # Rare fallback (numel not a multiple of 128, or < 1024 elements):
        # pad flat copies with zeros -- neutral for the squared-diff sum
        # because BOTH tensors are padded identically.
        rows_ceil = max(1, -(-total // lane))
        tile = max(8, min(max_tile_rows, -(-rows_ceil // 8) * 8))
        steps0 = -(-rows_ceil // (num_splits * tile))
        rows_slab = num_splits * steps0 * tile
        rows_valid = rows_slab
        padded = rows_slab * lane

        def to_slab(x):
            flat = jnp.pad(x.reshape(-1), (0, padded - total))
            return flat.reshape(rows_slab, lane)

        out2d = to_slab(output)
        lab2d = to_slab(labels)

    # Cap splits so every TensorCore has at least one full block of work.
    num_splits = max(1, min(num_splits, rows_slab // tile))
    steps = max(1, -(-rows_slab // (num_splits * tile)))
    n_blocks = -(-rows_slab // tile)          # physical blocks in the slab
    last_block = n_blocks - 1
    needs_mask = (num_splits * steps * tile) != rows_valid

    # Keep per-chunk squared-diff temporaries small (512 x 128 f32 = 256 KiB).
    n_chunks = tile // 512 if (tile % 512 == 0 and tile > 512) else 1

    if num_splits * steps > n_blocks:
        # Grid over-covers the slab: clamp the physical block index (the
        # excess rows contribute zero via the in-kernel mask).
        def block_map(c, i):
            return (jnp.minimum(c * steps + i, last_block), 0)
    else:
        def block_map(c, i):
            return (c * steps + i, 0)

    kernel = functools.partial(
        _mse_sum_kernel, inv_scale=inv_scale, rows_valid=rows_valid,
        tile=tile, steps=steps, n_chunks=n_chunks, needs_mask=needs_mask)

    bytes_accessed = 2 * total * output.dtype.itemsize + 4 * num_splits

    partials = pl.pallas_call(
        kernel,
        out_shape=jax.ShapeDtypeStruct((num_splits, 1), jnp.float32),
        grid_spec=pltpu.PrefetchScalarGridSpec(
            num_scalar_prefetch=0,
            grid=(num_splits, steps),
            in_specs=[
                pl.BlockSpec((tile, lane), block_map),
                pl.BlockSpec((tile, lane), block_map),
            ],
            out_specs=pl.BlockSpec((1, 1), lambda c, i: (c, 0),
                                   memory_space=pltpu.SMEM),
            scratch_shapes=[pltpu.VMEM((8, lane), jnp.float32)],
        ),
        compiler_params=pltpu.CompilerParams(
            # TODO(synk): on v7x, verify in a trace that axis 0 is sharded
            # across both TensorCores; if not, switch to pltpu.CORE_PARALLEL.
            dimension_semantics=("parallel", "arbitrary"),
        ),
        cost_estimate=pl.CostEstimate(
            flops=3 * total, transcendentals=0, bytes_accessed=bytes_accessed),
    )(out2d, lab2d)

    # Each per-split partial already carries the 1/(numel*batch) scaling.
    return jnp.sum(partials)


if __name__ == "__main__":
    key = jax.random.PRNGKey(0)
    k1, k2 = jax.random.split(key)
    # Small NCHW-style shapes consistent with the module's forward.
    output = jax.random.normal(k1, (2, 4, 16, 16), dtype=jnp.float32)
    labels = jax.random.normal(k2, (2, 4, 16, 16), dtype=jnp.float32)

    loss = custom_loss(output, labels)
    loss = jax.block_until_ready(loss)

    # Sanity check against pure-JAX reference of the PyTorch semantics.
    ref = jnp.mean((output - labels) ** 2) / output.shape[0]
    assert jnp.allclose(loss, ref, rtol=1e-6, atol=1e-6), (loss, ref)

    print("KERNEL_OK")
</pallas_src>

<mosaic_0001>
module attributes {stable_mosaic.version = 11 : i64} {
  func.func @_mse_sum_kernel(%arg0: i32, %arg1: i32, %arg2: memref<16x128xf32, #tpu.memory_space<vmem>>, %arg3: memref<16x128xf32, #tpu.memory_space<vmem>>, %arg4: memref<1x1xf32, #tpu.memory_space<smem>>, %arg5: memref<8x128xf32, #tpu.memory_space<vmem>>) attributes {dimension_semantics = [#tpu.dimension_semantics<parallel>, #tpu.dimension_semantics<arbitrary>], iteration_bounds = array<i64: 1, 1>, scalar_prefetch = 0 : i64, scratch_operands = 1 : i64, tpu.core_type = #tpu.core_type<tc>, window_params = [{transform_indices = @transform_0, window_bounds = array<i64: 16, 128>}, {transform_indices = @transform_1, window_bounds = array<i64: 16, 128>}, {transform_indices = @transform_2, window_bounds = array<i64: 1, 1>}]} {
    %c0_i32 = arith.constant 0 : i32
    %0 = arith.cmpi eq, %arg1, %c0_i32 : i32
    %1 = arith.extui %0 : i1 to i32
    %c0_i32_0 = arith.constant 0 : i32
    %2 = arith.cmpi ne, %1, %c0_i32_0 : i32
    scf.if %2 {
      %cst_10 = arith.constant 0.000000e+00 : f32
      %15 = vector.broadcast %cst_10 : f32 to vector<8x128xf32>
      %c0_11 = arith.constant 0 : index
      %c0_12 = arith.constant 0 : index
      %16 = vector.load %arg5[%c0_11, %c0_12] : memref<8x128xf32, #tpu.memory_space<vmem>>, vector<8x128xf32>
      tpu.vector_store %arg5[%c0_11, %c0_12], %15 {strides = array<i32>} : memref<8x128xf32, #tpu.memory_space<vmem>>, vector<8x128xf32>,
    } else {
    }
    %c0 = arith.constant 0 : index
    %c0_1 = arith.constant 0 : index
    %3 = vector.load %arg2[%c0, %c0_1] : memref<16x128xf32, #tpu.memory_space<vmem>>, vector<16x128xf32>
    %c0_2 = arith.constant 0 : index
    %c0_3 = arith.constant 0 : index
    %4 = vector.load %arg3[%c0_2, %c0_3] : memref<16x128xf32, #tpu.memory_space<vmem>>, vector<16x128xf32>
    %5 = arith.subf %3, %4 : vector<16x128xf32>
    %6 = arith.mulf %5, %5 : vector<16x128xf32>
    %c0_4 = arith.constant 0 : index
    %c0_5 = arith.constant 0 : index
    %7 = vector.load %arg5[%c0_4, %c0_5] : memref<8x128xf32, #tpu.memory_space<vmem>>, vector<8x128xf32>
    %8 = vector.shape_cast %6 : vector<16x128xf32> to vector<2x8x128xf32>
    %cst = arith.constant dense<0.000000e+00> : vector<8x128xf32>
    %9 = vector.multi_reduction <add>, %8, %cst [0] : vector<2x8x128xf32> to vector<8x128xf32>
    %10 = arith.addf %7, %9 : vector<8x128xf32>
    %c0_6 = arith.constant 0 : index
    %c0_7 = arith.constant 0 : index
    %11 = vector.load %arg5[%c0_6, %c0_7] : memref<8x128xf32, #tpu.memory_space<vmem>>, vector<8x128xf32>
    tpu.vector_store %arg5[%c0_6, %c0_7], %10 {strides = array<i32>} : memref<8x128xf32, #tpu.memory_space<vmem>>, vector<8x128xf32>,
    %c0_i32_8 = arith.constant 0 : i32
    %12 = arith.cmpi eq, %arg1, %c0_i32_8 : i32
    %13 = arith.extui %12 : i1 to i32
    %c0_i32_9 = arith.constant 0 : i32
    %14 = arith.cmpi ne, %13, %c0_i32_9 : i32
    scf.if %14 {
      %c0_10 = arith.constant 0 : index
      %c0_11 = arith.constant 0 : index
      %15 = vector.load %arg5[%c0_10, %c0_11] : memref<8x128xf32, #tpu.memory_space<vmem>>, vector<8x128xf32>
      %16 = vector.shape_cast %15 : vector<8x128xf32> to vector<1x8x128xf32>
      %cst_12 = arith.constant dense<0.000000e+00> : vector<1xf32>
      %17 = vector.multi_reduction <add>, %16, %cst_12 [1, 2] : vector<1x8x128xf32> to vector<1xf32>
      %18 = vector.shape_cast %17 : vector<1xf32> to vector<1x1x1xf32>
      %19 = vector.extract %18[0, 0, 0] : f32 from vector<1x1x1xf32>
      %cst_13 = arith.constant 2.44140625E-4 : f32
      %20 = arith.mulf %19, %cst_13 : f32
      %c0_14 = arith.constant 0 : index
      %c0_15 = arith.constant 0 : index
      %21 = memref.load %arg4[%c0_14, %c0_15] : memref<1x1xf32, #tpu.memory_space<smem>>
      memref.store %20, %arg4[%c0_14, %c0_15] : memref<1x1xf32, #tpu.memory_space<smem>>
    } else {
    }
    return
  }
  func.func @transform_0(%arg0: i32, %arg1: i32) -> (i32, i32) {
    %c1_i32 = arith.constant 1 : i32
    %0 = arith.muli %arg0, %c1_i32 : i32
    %1 = arith.addi %0, %arg1 : i32
    %c0_i32 = arith.constant 0 : i32
    %c0_i32_0 = arith.constant 0 : i32
    return %1, %c0_i32 : i32, i32
  }
  func.func @transform_1(%arg0: i32, %arg1: i32) -> (i32, i32) {
    %c1_i32 = arith.constant 1 : i32
    %0 = arith.muli %arg0, %c1_i32 : i32
    %1 = arith.addi %0, %arg1 : i32
    %c0_i32 = arith.constant 0 : i32
    %c0_i32_0 = arith.constant 0 : i32
    return %1, %c0_i32 : i32, i32
  }
  func.func @transform_2(%arg0: i32, %arg1: i32) -> (i32, i32) {
    %c0_i32 = arith.constant 0 : i32
    %c0_i32_0 = arith.constant 0 : i32
    return %arg0, %c0_i32 : i32, i32
  }
}

</mosaic_0001>

<bundles_post_ra>
// kernel: tpu_custom_call.1
= control target key start
LH: loop header
LB: loop body
LE: loop exit
PB: predicated region body
PF: predicated region fallthrough
CT: control target
= control target key end

     0   :  { %7 = vsyncpa [#allocation4], 0  ;;  %s223_s0 = inlined_call_operand.hbm [shape: f32[16,128], index: 0, kind: input, shape index: {}]   ;;  %s224_s1 = inlined_call_operand.hbm [shape: f32[16,128], index: 1, kind: input, shape index: {}]   ;;  %s225_s2 = inlined_call_operand.hbm [shape: f32[1,1], index: 2, kind: output, shape index: {}]  }
   0x1   :  { %8 = vsyncpa [#allocation7], 0 }
   0x2   :  { %9 = vsyncpa [#allocation5], 0  ;;  %s167_s9 = smov [#allocation3]   ;;  %s107_s13 = scalar_lea.hbm %s223_s0, 256 }
   0x3   :  { %s19_s10 = sshll.u32 %s167_s9, 4  ;;  %p108_p0 = scmp.ne.s32.totalorder %s223_s0, %s107_s13  ;;  %s20_s10 = int_to_ptr.vmem [resolvable:$true] %s19_s10 }
   0x4   :  { %p111_p1 = scmp.lt.u32.totalorder %s107_s13, %s223_s0 }
   0x6   :  { %p113_p2 = pnand %p111_p1, %p108_p0 }
   0x8   :  { %116 = shalt.err (!%p113_p2)
}
   0x9   :  { %s117_s18 = scalar_lea.vmem %s20_s10, 256  ;;  %p122_p4 = scmp.lt.s32.totalorder %s20_s10, %s20_s10 }
   0xa   :  { %p118_p3 = scmp.ne.s32.totalorder %s20_s10, %s117_s18  ;;  %p123_p5 = scmp.lt.s32.totalorder %s117_s18, %s117_s18 }
   0xc   :  { %p124_p6 = por %p123_p5, %p122_p4 }
   0xe   :  { %p125_p7 = pnand %p124_p6, %p118_p3 }
  0x10   :  { %128 = shalt.err (!%p125_p7)
}
  0x11   :  { %s168_s19 = smov 128   ;;  %s169_s20 = smov 8  }
  0x12   :  { %25 = dma.hbm_to_vmem [thread:$0]  %s223_s0, 256, %s20_s10, [#allocation4], %s168_s19, %s168_s19, %s169_s20  }
  0x13   :  { %s170_s23 = smov [#allocation6]   ;;  %s129_s27 = scalar_lea.hbm %s224_s1, 256 }
  0x14   :  { %s35_s24 = sshll.u32 %s170_s23, 4  ;;  %p130_p8 = scmp.ne.s32.totalorder %s224_s1, %s129_s27  ;;  %s36_s24 = int_to_ptr.vmem [resolvable:$true] %s35_s24 }
  0x15   :  { %p133_p9 = scmp.lt.u32.totalorder %s129_s27, %s224_s1 }
  0x17   :  { %p135_p10 = pnand %p133_p9, %p130_p8 }
  0x19   :  { %138 = shalt.err (!%p135_p10)
}
  0x1a   :  { %s139_s4 = scalar_lea.vmem %s36_s24, 256  ;;  %p144_p12 = scmp.lt.s32.totalorder %s36_s24, %s36_s24 }
  0x1b   :  { %p140_p11 = scmp.ne.s32.totalorder %s36_s24, %s139_s4  ;;  %p145_p13 = scmp.lt.s32.totalorder %s139_s4, %s139_s4 }
  0x1d   :  { %p146_p0 = por %p145_p13, %p144_p12 }
  0x1f   :  { %p147_p1 = pnand %p146_p0, %p140_p11 }
  0x21   :  { %150 = shalt.err (!%p147_p1)
}
  0x22   :  { %41 = dma.hbm_to_vmem [thread:$0]  %s224_s1, 256, %s36_s24, [#allocation7], %s168_s19, %s168_s19, %s169_s20  }
  0x23   :  { %161 = dma.done.wait [#allocation4], 256  }
  0x24   :  { %162 = vsyncadd [#allocation4], 4294967040 }
  0x25   :  { %163 = dma.done.wait [#allocation7], 256  }
  0x26   :  { %164 = vsyncadd [#allocation7], 4294967040  ;;  %v57_v0 = vld [vmem:[#allocation3] sm:$0xff]  ;;  %v58_v1 = vld [vmem:[#allocation3 + $0x8] sm:$0xff]  ;;  %s151_s9 = scalar_lea.hbm %s225_s2, 16 }
  0x27   :  { %v59_v2 = vld [vmem:[#allocation6] sm:$0xff]  ;;  %v60_v3 = vld [vmem:[#allocation6 + $0x8] sm:$0xff]  ;;  %p152_p2 = scmp.ne.s32.totalorder %s225_s2, %s151_s9  ;;  %p155_p3 = scmp.lt.u32.totalorder %s151_s9, %s225_s2 }
  0x28   :  { %v61_v4 = vsub.f32 %v57_v0, %v59_v2  ;;  %v62_v5 = vsub.f32 %v58_v1, %v60_v3 }
  0x29   :  { %p157_p4 = pnand %p155_p3, %p152_p2 }
  0x2a   :  { %v63_v6 = vmul.f32 %v61_v4, %v61_v4  ;;  %v64_v7 = vmul.f32 %v62_v5, %v62_v5 }
  0x2c   :  { %v66_v8 = vadd.f32 %v64_v7, %v63_v6 }
  0x2e   :  { %73 = vadd.xlane.f32.xlu0 %v66_v8 }
  0xbb   :  { %v74_v9 = vpop.xlane.xlu0 %73 }
  0xbc   :  { %v75_v10 = vrot.slane %v74_v9, 4 }
  0xbe   :  { %v76_v11 = vadd.f32 %v75_v10, %v74_v9 }
  0xc0   :  { %v77_v12 = vrot.slane %v76_v11, 2 }
  0xc2   :  { %v78_v13 = vadd.f32 %v77_v12, %v76_v11 }
  0xc4   :  { %v79_v14 = vrot.slane %v78_v13, 1 }
  0xc6   :  { %v80_v15 = vadd.f32 %v79_v14, %v78_v13 }
  0xc8   :  { %100 = vpush %v80_v15 }
  0xf9   :  { %s101_s1 = spop %100 }
  0xfa   :  { %s82_s6 = smul.f32 0.00024414063, %s101_s1 }
  0xfc   :  { %84 = sst [smem:[#allocation8]] %s82_s6 }
  0xfd   :  { %160 = shalt.err (!%p157_p4)
}
  0xfe   :  { %s171_s14 = smov [#allocation8]  }
  0xff   :  { %92 = dma.smem_to_hbm %s171_s14, 16, %s225_s2, [#allocation5]  }
 0x100   :  { %165 = dma.done.wait [#allocation5], 16  }
 0x101   :  { %166 = vsyncadd [#allocation5], 4294967280 }
 0x102   :  { %96 = sfence }
 0x103   :  { %97 = vsyncpa [#allocation4], 1 }
 0x104   :  { %98 = vsyncpa [#allocation7], 1 }
 0x105   :  { %99 = vsyncpa [#allocation5], 1 }

</bundles_post_ra>
